<compile_context>
chip_gen: v5e
topology: v5e:2x2
jax: 0.10.0
libtpu: 0.0.40
codegen_flags: <defaults>
</compile_context>

<pallas_src>
import jax
import jax.numpy as jnp
import numpy as np
from jax.experimental import pallas as pl
from jax.experimental.pallas import tpu as pltpu

# ---- module hyperparameters (defaults of FGCNN_Layer) ----
C_OUT = 3        # channels=[3]
KH = 3           # kernel_heights=[3]
POOL = 2         # pooling_sizes=[2]
REC_CH = 2       # recombined_channels=[2]
BN_EPS = 1e-5

# ---- problem sizes (small, consistent with the module) ----
B = 2            # batch
F = 8            # num_fields (even -> MaxPool2d padding = F % POOL = 0)
D = 16           # embedding_dim
FD = F * D                     # 128 -> exactly one lane tile
HP = F // POOL                 # pooled height = 4
IN_DIM = C_OUT * HP * D        # 192 (PyTorch Linear input dim)
OUT_DIM = REC_CH * HP * D      # 128 (PyTorch Linear output dim)

# TODO(synk): odd num_fields would need the (F % POOL, 0) MaxPool padding.
assert F % POOL == 0


def fgcnn_kernel(x_ref, wconv_ref, bconv_ref, gamma_ref, beta_ref,
                 wlin_ref, blin_ref, out_ref, lhs_ref):
    """Whole (small) problem in one invocation.

    x_ref:     (B, F*D)          VMEM f32, lane index = f*D + d
    wconv_ref: (C_OUT*KH,)       SMEM f32 (Conv2d weight, flattened)
    bconv_ref: (C_OUT,)          SMEM f32
    gamma_ref: (C_OUT,)          SMEM f32 (BatchNorm2d weight)
    beta_ref:  (C_OUT,)          SMEM f32 (BatchNorm2d bias)
    wlin_ref:  (IN_DIM, OUT_DIM) VMEM bf16 (recombine weight, = wlin.T)
    blin_ref:  (1, OUT_DIM)      VMEM f32
    out_ref:   (B, OUT_DIM)      VMEM f32
    lhs_ref:   (B, IN_DIM)       VMEM f32 scratch (compacted pooled acts)
    """
    x = x_ref[...]                                            # (B, FD)
    lane = jax.lax.broadcasted_iota(jnp.int32, (B, FD), 1)

    # Field shift +/-1 as lane rotations by D (XLU) + zeroing of the padded
    # edge row (Conv2d padding=(1,0)).
    x_m1 = jnp.where(lane < D, 0.0, pltpu.roll(x, D, axis=1))            # field f-1
    x_p1 = jnp.where(lane >= FD - D, 0.0, pltpu.roll(x, FD - D, axis=1))  # field f+1

    for c in range(C_OUT):
        # Conv2d(1, C_OUT, (KH,1), padding=(1,0)) is cross-correlation:
        # tap k=0 multiplies field f-1, k=1 -> f, k=2 -> f+1.  Matches PyTorch.
        conv_c = (wconv_ref[c * KH + 0] * x_m1
                  + wconv_ref[c * KH + 1] * x
                  + wconv_ref[c * KH + 2] * x_p1
                  + bconv_ref[c])                             # (B, FD), one vreg

        # BatchNorm2d, training mode: per-channel biased batch statistics on a
        # single (B, FD) slab; two-pass variance (cancellation-safe).
        # TODO(synk): running_mean/running_var updates (training side effect)
        # are not modeled; forward-normalized output only.
        mean_c = jnp.mean(conv_c, axis=(0, 1), keepdims=True)            # (1,1)
        centered = conv_c - mean_c
        var_c = jnp.mean(centered * centered, axis=(0, 1), keepdims=True)
        inv_c = jax.lax.rsqrt(var_c + BN_EPS)

        y_c = jnp.tanh(centered * (inv_c * gamma_ref[c]) + beta_ref[c])  # (B, FD)

        # MaxPool2d((2,1)): max of fields (2h, 2h+1); valid values land at
        # even-field lanes after the roll.
        m_c = jnp.maximum(y_c, pltpu.roll(y_c, FD - D, axis=1))

        # Compact the even-field groups into the LHS scratch in PyTorch
        # flatten order (c*HP*D + h*D + d) -> K = 192 (no zero-padded K=384).
        for h in range(HP):
            lhs_ref[:, (c * HP + h) * D:(c * HP + h + 1) * D] = \
                m_c[:, (2 * h) * D:(2 * h) * D + D]

    # Recombine Linear + Tanh: one MXU matmul (B,192)bf16 @ (192,128)bf16,
    # f32 accumulation.
    a = lhs_ref[...].astype(jnp.bfloat16)
    out_ref[...] = jnp.tanh(
        jnp.dot(a, wlin_ref[...], preferred_element_type=jnp.float32)
        + blin_ref[...])


# Advisory cost hint: the kernel is launch/DMA-latency bound, so let XLA
# schedule/overlap it once the forward is jitted.
_COST = pl.CostEstimate(
    flops=2 * B * IN_DIM * OUT_DIM + 12 * C_OUT * B * FD,
    transcendentals=C_OUT * B * FD + B * OUT_DIM + C_OUT,
    bytes_accessed=(B * FD * 4                 # x
                    + IN_DIM * OUT_DIM * 2     # bf16 recombine weight
                    + OUT_DIM * 4              # bias
                    + B * OUT_DIM * 4          # output
                    + (C_OUT * KH + 3 * C_OUT) * 4),
)


def prepare_params(wconv, bconv, gamma, beta, wlin, blin):
    """One-time (init-time) parameter re-layout, hoisted off the hot path."""
    return dict(
        wconv=wconv.reshape(-1).astype(jnp.float32),     # (C_OUT*KH,)
        bconv=bconv.astype(jnp.float32),                 # (C_OUT,)
        gamma=gamma.astype(jnp.float32),                 # (C_OUT,)
        beta=beta.astype(jnp.float32),                   # (C_OUT,)
        wlin_t=wlin.T.astype(jnp.bfloat16),              # (IN_DIM, OUT_DIM)
        blin=blin.reshape(1, OUT_DIM).astype(jnp.float32),
    )


@jax.jit
def fgcnn_forward(x, params):
    """x: (B, 1, F, D) NCHW like the PyTorch module.  Returns (B, REC_CH*HP, D)."""
    x2 = x.reshape(B, FD)                                 # lane-dense input
    out = pl.pallas_call(
        fgcnn_kernel,
        out_shape=jax.ShapeDtypeStruct((B, OUT_DIM), jnp.float32),
        in_specs=[
            pl.BlockSpec(memory_space=pltpu.MemorySpace.VMEM),   # x (B, FD)
            pl.BlockSpec(memory_space=pltpu.MemorySpace.SMEM),   # conv weight (9,)
            pl.BlockSpec(memory_space=pltpu.MemorySpace.SMEM),   # conv bias (3,)
            pl.BlockSpec(memory_space=pltpu.MemorySpace.SMEM),   # bn gamma (3,)
            pl.BlockSpec(memory_space=pltpu.MemorySpace.SMEM),   # bn beta (3,)
            pl.BlockSpec(memory_space=pltpu.MemorySpace.VMEM),   # recombine W^T bf16
            pl.BlockSpec(memory_space=pltpu.MemorySpace.VMEM),   # recombine bias
        ],
        out_specs=pl.BlockSpec(memory_space=pltpu.MemorySpace.VMEM),
        scratch_shapes=[pltpu.VMEM((B, IN_DIM), jnp.float32)],
        cost_estimate=_COST,
    )(x2, params["wconv"], params["bconv"], params["gamma"], params["beta"],
      params["wlin_t"], params["blin"])
    # new_feature_list has a single entry; concat(dim=1) is a no-op here.
    return out.reshape(B, -1, D)                          # (B, 8, D)


def fgcnn_reference(x, wconv, bconv, gamma, beta, wlin, blin):
    """Plain-JAX f32 replica of the PyTorch forward (train-mode BN)."""
    x3 = x[:, 0]
    zero = jnp.zeros((B, 1, D), jnp.float32)
    xm = jnp.concatenate([zero, x3[:, :-1]], axis=1)
    xp = jnp.concatenate([x3[:, 1:], zero], axis=1)
    chans = []
    for c in range(C_OUT):
        conv_c = wconv[c, 0] * xm + wconv[c, 1] * x3 + wconv[c, 2] * xp + bconv[c]
        mean = conv_c.mean()
        var = ((conv_c - mean) ** 2).mean()
        y = (conv_c - mean) / jnp.sqrt(var + BN_EPS) * gamma[c] + beta[c]
        y = jnp.tanh(y)
        y = jnp.maximum(y[:, 0::2], y[:, 1::2])            # (B, HP, D)
        chans.append(y)
    pool = jnp.stack(chans, axis=1)                        # (B, C_OUT, HP, D)
    flat = pool.reshape(B, -1)
    lin = jnp.tanh(flat @ wlin.T + blin)
    return lin.reshape(B, -1, D)


if __name__ == "__main__":
    key = jax.random.PRNGKey(0)
    ks = jax.random.split(key, 7)
    x = jax.random.normal(ks[0], (B, 1, F, D), jnp.float32)
    wconv = jax.random.normal(ks[1], (C_OUT, KH), jnp.float32) * 0.3
    bconv = jax.random.normal(ks[2], (C_OUT,), jnp.float32) * 0.1
    gamma = 1.0 + 0.1 * jax.random.normal(ks[3], (C_OUT,), jnp.float32)
    beta = 0.1 * jax.random.normal(ks[4], (C_OUT,), jnp.float32)
    wlin = jax.random.normal(ks[5], (OUT_DIM, IN_DIM), jnp.float32) / np.sqrt(IN_DIM)
    blin = 0.1 * jax.random.normal(ks[6], (OUT_DIM,), jnp.float32)

    params = prepare_params(wconv, bconv, gamma, beta, wlin, blin)

    out = fgcnn_forward(x, params)
    out = jax.block_until_ready(out)

    ref = jax.block_until_ready(
        fgcnn_reference(x, wconv, bconv, gamma, beta, wlin, blin))
    assert out.shape == (B, REC_CH * HP, D), out.shape
    # Tolerance loosened vs the f32 reference because the recombine matmul
    # runs with bf16 operands (f32 accumulation).
    np.testing.assert_allclose(np.asarray(out), np.asarray(ref),
                               rtol=2e-2, atol=2e-2)
    print("KERNEL_OK")
</pallas_src>

<mosaic_0001>
module attributes {stable_mosaic.version = 11 : i64} {
  func.func @fgcnn_kernel(%arg0: memref<2x128xf32, #tpu.memory_space<vmem>>, %arg1: memref<9xf32, #tpu.memory_space<smem>>, %arg2: memref<3xf32, #tpu.memory_space<smem>>, %arg3: memref<3xf32, #tpu.memory_space<smem>>, %arg4: memref<3xf32, #tpu.memory_space<smem>>, %arg5: memref<192x128xbf16, #tpu.memory_space<vmem>>, %arg6: memref<1x128xf32, #tpu.memory_space<vmem>>, %arg7: memref<2x128xf32, #tpu.memory_space<vmem>>, %arg8: memref<2x192xf32, #tpu.memory_space<vmem>>) attributes {dimension_semantics = [], scalar_prefetch = 0 : i64, scratch_operands = 1 : i64, tpu.core_type = #tpu.core_type<tc>} {
    %c0 = arith.constant 0 : index
    %c0_0 = arith.constant 0 : index
    %0 = vector.load %arg0[%c0, %c0_0] : memref<2x128xf32, #tpu.memory_space<vmem>>, vector<2x128xf32>
    %1 = tpu.iota {dimensions = array<i32: 1>} : vector<2x128xi32>
    %c16_i32 = arith.constant 16 : i32
    %2 = vector.broadcast %c16_i32 : i32 to vector<2x128xi32>
    %3 = arith.cmpi slt, %1, %2 : vector<2x128xi32>
    %c16_i32_1 = arith.constant 16 : i32
    %4 = tpu.dynamic_rotate %0 by %c16_i32_1 dim 1 : vector<2x128xf32>, i32 -> vector<2x128xf32>
    %cst = arith.constant 0.000000e+00 : f32
    %5 = vector.broadcast %cst : f32 to vector<2x128xf32>
    %6 = arith.select %3, %5, %4 : vector<2x128xi1>, vector<2x128xf32>
    %c112_i32 = arith.constant 112 : i32
    %7 = vector.broadcast %c112_i32 : i32 to vector<2x128xi32>
    %8 = arith.cmpi sge, %1, %7 : vector<2x128xi32>
    %c112_i32_2 = arith.constant 112 : i32
    %9 = tpu.dynamic_rotate %0 by %c112_i32_2 dim 1 : vector<2x128xf32>, i32 -> vector<2x128xf32>
    %cst_3 = arith.constant 0.000000e+00 : f32
    %10 = vector.broadcast %cst_3 : f32 to vector<2x128xf32>
    %11 = arith.select %8, %10, %9 : vector<2x128xi1>, vector<2x128xf32>
    %c0_4 = arith.constant 0 : index
    %12 = memref.load %arg1[%c0_4] : memref<9xf32, #tpu.memory_space<smem>>
    %13 = vector.broadcast %12 : f32 to vector<2x128xf32>
    %14 = arith.mulf %13, %6 : vector<2x128xf32>
    %c1 = arith.constant 1 : index
    %15 = memref.load %arg1[%c1] : memref<9xf32, #tpu.memory_space<smem>>
    %16 = vector.broadcast %15 : f32 to vector<2x128xf32>
    %17 = arith.mulf %16, %0 : vector<2x128xf32>
    %18 = arith.addf %14, %17 : vector<2x128xf32>
    %c2 = arith.constant 2 : index
    %19 = memref.load %arg1[%c2] : memref<9xf32, #tpu.memory_space<smem>>
    %20 = vector.broadcast %19 : f32 to vector<2x128xf32>
    %21 = arith.mulf %20, %11 : vector<2x128xf32>
    %22 = arith.addf %18, %21 : vector<2x128xf32>
    %c0_5 = arith.constant 0 : index
    %23 = memref.load %arg2[%c0_5] : memref<3xf32, #tpu.memory_space<smem>>
    %24 = vector.broadcast %23 : f32 to vector<2x128xf32>
    %25 = arith.addf %22, %24 : vector<2x128xf32>
    %26 = vector.shape_cast %25 : vector<2x128xf32> to vector<1x2x128xf32>
    %cst_6 = arith.constant dense<0.000000e+00> : vector<1xf32>
    %27 = vector.multi_reduction <add>, %26, %cst_6 [1, 2] : vector<1x2x128xf32> to vector<1xf32>
    %28 = vector.shape_cast %27 : vector<1xf32> to vector<1x1x1xf32>
    %29 = vector.extract %28[0, 0, 0] : f32 from vector<1x1x1xf32>
    %30 = vector.broadcast %29 : f32 to vector<1x1xf32>
    %cst_7 = arith.constant 2.560000e+02 : f32
    %31 = vector.broadcast %cst_7 : f32 to vector<1x1xf32>
    %32 = arith.divf %30, %31 : vector<1x1xf32>
    %33 = vector.broadcast %32 : vector<1x1xf32> to vector<2x128xf32>
    %34 = arith.subf %25, %33 : vector<2x128xf32>
    %35 = arith.mulf %34, %34 : vector<2x128xf32>
    %36 = vector.shape_cast %35 : vector<2x128xf32> to vector<1x2x128xf32>
    %cst_8 = arith.constant dense<0.000000e+00> : vector<1xf32>
    %37 = vector.multi_reduction <add>, %36, %cst_8 [1, 2] : vector<1x2x128xf32> to vector<1xf32>
    %38 = vector.shape_cast %37 : vector<1xf32> to vector<1x1x1xf32>
    %39 = vector.extract %38[0, 0, 0] : f32 from vector<1x1x1xf32>
    %40 = vector.broadcast %39 : f32 to vector<1x1xf32>
    %cst_9 = arith.constant 2.560000e+02 : f32
    %41 = vector.broadcast %cst_9 : f32 to vector<1x1xf32>
    %42 = arith.divf %40, %41 : vector<1x1xf32>
    %cst_10 = arith.constant 9.99999974E-6 : f32
    %43 = vector.broadcast %cst_10 : f32 to vector<1x1xf32>
    %44 = arith.addf %42, %43 : vector<1x1xf32>
    %45 = math.rsqrt %44 : vector<1x1xf32>
    %c0_11 = arith.constant 0 : index
    %46 = memref.load %arg3[%c0_11] : memref<3xf32, #tpu.memory_space<smem>>
    %47 = vector.broadcast %46 : f32 to vector<1x1xf32>
    %48 = arith.mulf %45, %47 : vector<1x1xf32>
    %49 = vector.broadcast %48 : vector<1x1xf32> to vector<2x128xf32>
    %50 = arith.mulf %34, %49 : vector<2x128xf32>
    %c0_12 = arith.constant 0 : index
    %51 = memref.load %arg4[%c0_12] : memref<3xf32, #tpu.memory_space<smem>>
    %52 = vector.broadcast %51 : f32 to vector<2x128xf32>
    %53 = arith.addf %50, %52 : vector<2x128xf32>
    %54 = math.tanh %53 : vector<2x128xf32>
    %c112_i32_13 = arith.constant 112 : i32
    %55 = tpu.dynamic_rotate %54 by %c112_i32_13 dim 1 : vector<2x128xf32>, i32 -> vector<2x128xf32>
    %56 = arith.maximumf %54, %55 : vector<2x128xf32>
    %57 = vector.extract_strided_slice %56 {offsets = [0, 0], sizes = [2, 16], strides = [1, 1]} : vector<2x128xf32> to vector<2x16xf32>
    %c0_14 = arith.constant 0 : index
    %c0_15 = arith.constant 0 : index
    %58 = vector.load %arg8[%c0_14, %c0_15] : memref<2x192xf32, #tpu.memory_space<vmem>>, vector<2x16xf32>
    tpu.vector_store %arg8[%c0_14, %c0_15], %57 {strides = array<i32>} : memref<2x192xf32, #tpu.memory_space<vmem>>, vector<2x16xf32>,
    %59 = vector.extract_strided_slice %56 {offsets = [0, 32], sizes = [2, 16], strides = [1, 1]} : vector<2x128xf32> to vector<2x16xf32>
    %c0_16 = arith.constant 0 : index
    %c16 = arith.constant 16 : index
    %60 = vector.load %arg8[%c0_16, %c16] : memref<2x192xf32, #tpu.memory_space<vmem>>, vector<2x16xf32>
    tpu.vector_store %arg8[%c0_16, %c16], %59 {strides = array<i32>} : memref<2x192xf32, #tpu.memory_space<vmem>>, vector<2x16xf32>,
    %61 = vector.extract_strided_slice %56 {offsets = [0, 64], sizes = [2, 16], strides = [1, 1]} : vector<2x128xf32> to vector<2x16xf32>
    %c0_17 = arith.constant 0 : index
    %c32 = arith.constant 32 : index
    %62 = vector.load %arg8[%c0_17, %c32] : memref<2x192xf32, #tpu.memory_space<vmem>>, vector<2x16xf32>
    tpu.vector_store %arg8[%c0_17, %c32], %61 {strides = array<i32>} : memref<2x192xf32, #tpu.memory_space<vmem>>, vector<2x16xf32>,
    %63 = vector.extract_strided_slice %56 {offsets = [0, 96], sizes = [2, 16], strides = [1, 1]} : vector<2x128xf32> to vector<2x16xf32>
    %c0_18 = arith.constant 0 : index
    %c48 = arith.constant 48 : index
    %64 = vector.load %arg8[%c0_18, %c48] : memref<2x192xf32, #tpu.memory_space<vmem>>, vector<2x16xf32>
    tpu.vector_store %arg8[%c0_18, %c48], %63 {strides = array<i32>} : memref<2x192xf32, #tpu.memory_space<vmem>>, vector<2x16xf32>,
    %c3 = arith.constant 3 : index
    %65 = memref.load %arg1[%c3] : memref<9xf32, #tpu.memory_space<smem>>
    %66 = vector.broadcast %65 : f32 to vector<2x128xf32>
    %67 = arith.mulf %66, %6 : vector<2x128xf32>
    %c4 = arith.constant 4 : index
    %68 = memref.load %arg1[%c4] : memref<9xf32, #tpu.memory_space<smem>>
    %69 = vector.broadcast %68 : f32 to vector<2x128xf32>
    %70 = arith.mulf %69, %0 : vector<2x128xf32>
    %71 = arith.addf %67, %70 : vector<2x128xf32>
    %c5 = arith.constant 5 : index
    %72 = memref.load %arg1[%c5] : memref<9xf32, #tpu.memory_space<smem>>
    %73 = vector.broadcast %72 : f32 to vector<2x128xf32>
    %74 = arith.mulf %73, %11 : vector<2x128xf32>
    %75 = arith.addf %71, %74 : vector<2x128xf32>
    %c1_19 = arith.constant 1 : index
    %76 = memref.load %arg2[%c1_19] : memref<3xf32, #tpu.memory_space<smem>>
    %77 = vector.broadcast %76 : f32 to vector<2x128xf32>
    %78 = arith.addf %75, %77 : vector<2x128xf32>
    %79 = vector.shape_cast %78 : vector<2x128xf32> to vector<1x2x128xf32>
    %cst_20 = arith.constant dense<0.000000e+00> : vector<1xf32>
    %80 = vector.multi_reduction <add>, %79, %cst_20 [1, 2] : vector<1x2x128xf32> to vector<1xf32>
    %81 = vector.shape_cast %80 : vector<1xf32> to vector<1x1x1xf32>
    %82 = vector.extract %81[0, 0, 0] : f32 from vector<1x1x1xf32>
    %83 = vector.broadcast %82 : f32 to vector<1x1xf32>
    %cst_21 = arith.constant 2.560000e+02 : f32
    %84 = vector.broadcast %cst_21 : f32 to vector<1x1xf32>
    %85 = arith.divf %83, %84 : vector<1x1xf32>
    %86 = vector.broadcast %85 : vector<1x1xf32> to vector<2x128xf32>
    %87 = arith.subf %78, %86 : vector<2x128xf32>
    %88 = arith.mulf %87, %87 : vector<2x128xf32>
    %89 = vector.shape_cast %88 : vector<2x128xf32> to vector<1x2x128xf32>
    %cst_22 = arith.constant dense<0.000000e+00> : vector<1xf32>
    %90 = vector.multi_reduction <add>, %89, %cst_22 [1, 2] : vector<1x2x128xf32> to vector<1xf32>
    %91 = vector.shape_cast %90 : vector<1xf32> to vector<1x1x1xf32>
    %92 = vector.extract %91[0, 0, 0] : f32 from vector<1x1x1xf32>
    %93 = vector.broadcast %92 : f32 to vector<1x1xf32>
    %cst_23 = arith.constant 2.560000e+02 : f32
    %94 = vector.broadcast %cst_23 : f32 to vector<1x1xf32>
    %95 = arith.divf %93, %94 : vector<1x1xf32>
    %cst_24 = arith.constant 9.99999974E-6 : f32
    %96 = vector.broadcast %cst_24 : f32 to vector<1x1xf32>
    %97 = arith.addf %95, %96 : vector<1x1xf32>
    %98 = math.rsqrt %97 : vector<1x1xf32>
    %c1_25 = arith.constant 1 : index
    %99 = memref.load %arg3[%c1_25] : memref<3xf32, #tpu.memory_space<smem>>
    %100 = vector.broadcast %99 : f32 to vector<1x1xf32>
    %101 = arith.mulf %98, %100 : vector<1x1xf32>
    %102 = vector.broadcast %101 : vector<1x1xf32> to vector<2x128xf32>
    %103 = arith.mulf %87, %102 : vector<2x128xf32>
    %c1_26 = arith.constant 1 : index
    %104 = memref.load %arg4[%c1_26] : memref<3xf32, #tpu.memory_space<smem>>
    %105 = vector.broadcast %104 : f32 to vector<2x128xf32>
    %106 = arith.addf %103, %105 : vector<2x128xf32>
    %107 = math.tanh %106 : vector<2x128xf32>
    %c112_i32_27 = arith.constant 112 : i32
    %108 = tpu.dynamic_rotate %107 by %c112_i32_27 dim 1 : vector<2x128xf32>, i32 -> vector<2x128xf32>
    %109 = arith.maximumf %107, %108 : vector<2x128xf32>
    %110 = vector.extract_strided_slice %109 {offsets = [0, 0], sizes = [2, 16], strides = [1, 1]} : vector<2x128xf32> to vector<2x16xf32>
    %c0_28 = arith.constant 0 : index
    %c64 = arith.constant 64 : index
    %111 = vector.load %arg8[%c0_28, %c64] : memref<2x192xf32, #tpu.memory_space<vmem>>, vector<2x16xf32>
    tpu.vector_store %arg8[%c0_28, %c64], %110 {strides = array<i32>} : memref<2x192xf32, #tpu.memory_space<vmem>>, vector<2x16xf32>,
    %112 = vector.extract_strided_slice %109 {offsets = [0, 32], sizes = [2, 16], strides = [1, 1]} : vector<2x128xf32> to vector<2x16xf32>
    %c0_29 = arith.constant 0 : index
    %c80 = arith.constant 80 : index
    %113 = vector.load %arg8[%c0_29, %c80] : memref<2x192xf32, #tpu.memory_space<vmem>>, vector<2x16xf32>
    tpu.vector_store %arg8[%c0_29, %c80], %112 {strides = array<i32>} : memref<2x192xf32, #tpu.memory_space<vmem>>, vector<2x16xf32>,
    %114 = vector.extract_strided_slice %109 {offsets = [0, 64], sizes = [2, 16], strides = [1, 1]} : vector<2x128xf32> to vector<2x16xf32>
    %c0_30 = arith.constant 0 : index
    %c96 = arith.constant 96 : index
    %115 = vector.load %arg8[%c0_30, %c96] : memref<2x192xf32, #tpu.memory_space<vmem>>, vector<2x16xf32>
    tpu.vector_store %arg8[%c0_30, %c96], %114 {strides = array<i32>} : memref<2x192xf32, #tpu.memory_space<vmem>>, vector<2x16xf32>,
    %116 = vector.extract_strided_slice %109 {offsets = [0, 96], sizes = [2, 16], strides = [1, 1]} : vector<2x128xf32> to vector<2x16xf32>
    %c0_31 = arith.constant 0 : index
    %c112 = arith.constant 112 : index
    %117 = vector.load %arg8[%c0_31, %c112] : memref<2x192xf32, #tpu.memory_space<vmem>>, vector<2x16xf32>
    tpu.vector_store %arg8[%c0_31, %c112], %116 {strides = array<i32>} : memref<2x192xf32, #tpu.memory_space<vmem>>, vector<2x16xf32>,
    %c6 = arith.constant 6 : index
    %118 = memref.load %arg1[%c6] : memref<9xf32, #tpu.memory_space<smem>>
    %119 = vector.broadcast %118 : f32 to vector<2x128xf32>
    %120 = arith.mulf %119, %6 : vector<2x128xf32>
    %c7 = arith.constant 7 : index
    %121 = memref.load %arg1[%c7] : memref<9xf32, #tpu.memory_space<smem>>
    %122 = vector.broadcast %121 : f32 to vector<2x128xf32>
    %123 = arith.mulf %122, %0 : vector<2x128xf32>
    %124 = arith.addf %120, %123 : vector<2x128xf32>
    %c8 = arith.constant 8 : index
    %125 = memref.load %arg1[%c8] : memref<9xf32, #tpu.memory_space<smem>>
    %126 = vector.broadcast %125 : f32 to vector<2x128xf32>
    %127 = arith.mulf %126, %11 : vector<2x128xf32>
    %128 = arith.addf %124, %127 : vector<2x128xf32>
    %c2_32 = arith.constant 2 : index
    %129 = memref.load %arg2[%c2_32] : memref<3xf32, #tpu.memory_space<smem>>
    %130 = vector.broadcast %129 : f32 to vector<2x128xf32>
    %131 = arith.addf %128, %130 : vector<2x128xf32>
    %132 = vector.shape_cast %131 : vector<2x128xf32> to vector<1x2x128xf32>
    %cst_33 = arith.constant dense<0.000000e+00> : vector<1xf32>
    %133 = vector.multi_reduction <add>, %132, %cst_33 [1, 2] : vector<1x2x128xf32> to vector<1xf32>
    %134 = vector.shape_cast %133 : vector<1xf32> to vector<1x1x1xf32>
    %135 = vector.extract %134[0, 0, 0] : f32 from vector<1x1x1xf32>
    %136 = vector.broadcast %135 : f32 to vector<1x1xf32>
    %cst_34 = arith.constant 2.560000e+02 : f32
    %137 = vector.broadcast %cst_34 : f32 to vector<1x1xf32>
    %138 = arith.divf %136, %137 : vector<1x1xf32>
    %139 = vector.broadcast %138 : vector<1x1xf32> to vector<2x128xf32>
    %140 = arith.subf %131, %139 : vector<2x128xf32>
    %141 = arith.mulf %140, %140 : vector<2x128xf32>
    %142 = vector.shape_cast %141 : vector<2x128xf32> to vector<1x2x128xf32>
    %cst_35 = arith.constant dense<0.000000e+00> : vector<1xf32>
    %143 = vector.multi_reduction <add>, %142, %cst_35 [1, 2] : vector<1x2x128xf32> to vector<1xf32>
    %144 = vector.shape_cast %143 : vector<1xf32> to vector<1x1x1xf32>
    %145 = vector.extract %144[0, 0, 0] : f32 from vector<1x1x1xf32>
    %146 = vector.broadcast %145 : f32 to vector<1x1xf32>
    %cst_36 = arith.constant 2.560000e+02 : f32
    %147 = vector.broadcast %cst_36 : f32 to vector<1x1xf32>
    %148 = arith.divf %146, %147 : vector<1x1xf32>
    %cst_37 = arith.constant 9.99999974E-6 : f32
    %149 = vector.broadcast %cst_37 : f32 to vector<1x1xf32>
    %150 = arith.addf %148, %149 : vector<1x1xf32>
    %151 = math.rsqrt %150 : vector<1x1xf32>
    %c2_38 = arith.constant 2 : index
    %152 = memref.load %arg3[%c2_38] : memref<3xf32, #tpu.memory_space<smem>>
    %153 = vector.broadcast %152 : f32 to vector<1x1xf32>
    %154 = arith.mulf %151, %153 : vector<1x1xf32>
    %155 = vector.broadcast %154 : vector<1x1xf32> to vector<2x128xf32>
    %156 = arith.mulf %140, %155 : vector<2x128xf32>
    %c2_39 = arith.constant 2 : index
    %157 = memref.load %arg4[%c2_39] : memref<3xf32, #tpu.memory_space<smem>>
    %158 = vector.broadcast %157 : f32 to vector<2x128xf32>
    %159 = arith.addf %156, %158 : vector<2x128xf32>
    %160 = math.tanh %159 : vector<2x128xf32>
    %c112_i32_40 = arith.constant 112 : i32
    %161 = tpu.dynamic_rotate %160 by %c112_i32_40 dim 1 : vector<2x128xf32>, i32 -> vector<2x128xf32>
    %162 = arith.maximumf %160, %161 : vector<2x128xf32>
    %163 = vector.extract_strided_slice %162 {offsets = [0, 0], sizes = [2, 16], strides = [1, 1]} : vector<2x128xf32> to vector<2x16xf32>
    %c0_41 = arith.constant 0 : index
    %c128 = arith.constant 128 : index
    %164 = vector.load %arg8[%c0_41, %c128] : memref<2x192xf32, #tpu.memory_space<vmem>>, vector<2x16xf32>
    tpu.vector_store %arg8[%c0_41, %c128], %163 {strides = array<i32>} : memref<2x192xf32, #tpu.memory_space<vmem>>, vector<2x16xf32>,
    %165 = vector.extract_strided_slice %162 {offsets = [0, 32], sizes = [2, 16], strides = [1, 1]} : vector<2x128xf32> to vector<2x16xf32>
    %c0_42 = arith.constant 0 : index
    %c144 = arith.constant 144 : index
    %166 = vector.load %arg8[%c0_42, %c144] : memref<2x192xf32, #tpu.memory_space<vmem>>, vector<2x16xf32>
    tpu.vector_store %arg8[%c0_42, %c144], %165 {strides = array<i32>} : memref<2x192xf32, #tpu.memory_space<vmem>>, vector<2x16xf32>,
    %167 = vector.extract_strided_slice %162 {offsets = [0, 64], sizes = [2, 16], strides = [1, 1]} : vector<2x128xf32> to vector<2x16xf32>
    %c0_43 = arith.constant 0 : index
    %c160 = arith.constant 160 : index
    %168 = vector.load %arg8[%c0_43, %c160] : memref<2x192xf32, #tpu.memory_space<vmem>>, vector<2x16xf32>
    tpu.vector_store %arg8[%c0_43, %c160], %167 {strides = array<i32>} : memref<2x192xf32, #tpu.memory_space<vmem>>, vector<2x16xf32>,
    %169 = vector.extract_strided_slice %162 {offsets = [0, 96], sizes = [2, 16], strides = [1, 1]} : vector<2x128xf32> to vector<2x16xf32>
    %c0_44 = arith.constant 0 : index
    %c176 = arith.constant 176 : index
    %170 = vector.load %arg8[%c0_44, %c176] : memref<2x192xf32, #tpu.memory_space<vmem>>, vector<2x16xf32>
    tpu.vector_store %arg8[%c0_44, %c176], %169 {strides = array<i32>} : memref<2x192xf32, #tpu.memory_space<vmem>>, vector<2x16xf32>,
    %c0_45 = arith.constant 0 : index
    %c0_46 = arith.constant 0 : index
    %171 = vector.load %arg8[%c0_45, %c0_46] : memref<2x192xf32, #tpu.memory_space<vmem>>, vector<2x192xf32>
    %172 = arith.truncf %171 : vector<2x192xf32> to vector<2x192xbf16>
    %c0_47 = arith.constant 0 : index
    %c0_48 = arith.constant 0 : index
    %173 = vector.load %arg5[%c0_47, %c0_48] : memref<192x128xbf16, #tpu.memory_space<vmem>>, vector<192x128xbf16>
    %cst_49 = arith.constant dense<0.000000e+00> : vector<2x128xf32>
    %174 = tpu.matmul %172, %173, %cst_49 {dimension_numbers = #tpu.dot_dimension_numbers<[1], [0], [0], [1], [0, 0, 1, 1], [], []>} : vector<2x192xbf16>, vector<192x128xbf16>, vector<2x128xf32> -> vector<2x128xf32>
    %c0_50 = arith.constant 0 : index
    %c0_51 = arith.constant 0 : index
    %175 = vector.load %arg6[%c0_50, %c0_51] : memref<1x128xf32, #tpu.memory_space<vmem>>, vector<1x128xf32>
    %176 = vector.broadcast %175 : vector<1x128xf32> to vector<2x128xf32>
    %177 = arith.addf %174, %176 : vector<2x128xf32>
    %178 = math.tanh %177 : vector<2x128xf32>
    %c0_52 = arith.constant 0 : index
    %c0_53 = arith.constant 0 : index
    %179 = vector.load %arg7[%c0_52, %c0_53] : memref<2x128xf32, #tpu.memory_space<vmem>>, vector<2x128xf32>
    tpu.vector_store %arg7[%c0_52, %c0_53], %178 {strides = array<i32>} : memref<2x128xf32, #tpu.memory_space<vmem>>, vector<2x128xf32>,
    return
  }
}

</mosaic_0001>

<bundles_post_ra>
// kernel: fgcnn_forward.1
= control target key start
LH: loop header
LB: loop body
LE: loop exit
PB: predicated region body
PF: predicated region fallthrough
CT: control target
= control target key end

     0   :  { %12 = vsyncpa [#allocation5], 0  ;;  %s832_s0 = inlined_call_operand.vmem [shape: f32[2,128], index: 0, kind: input, shape index: {}]   ;;  %s833_s1 = inlined_call_operand.vmem [shape: f32[9], index: 1, kind: input, shape index: {}]   ;;  %s834_s2 = inlined_call_operand.vmem [shape: f32[3], index: 2, kind: input, shape index: {}]   ;;  %s835_s3 = inlined_call_operand.vmem [shape: f32[3], index: 3, kind: input, shape index: {}]   ;;  %s836_s4 = inlined_call_operand.vmem [shape: f32[3], index: 4, kind: input, shape index: {}]   ;;  %s837_s5 = inlined_call_operand.hbm [shape: bf16[192,128], index: 5, kind: input, shape index: {}]   ;;  %s838_s6 = inlined_call_operand.vmem [shape: f32[1,128], index: 6, kind: input, shape index: {}]   ;;  %s839_s7 = inlined_call_operand.vmem [shape: f32[2,128], index: 7, kind: output, shape index: {}]  }
   0x1   :  { %13 = vsyncpa [#allocation7], 0 }
   0x2   :  { %14 = vsyncpa [#allocation10], 0  ;;  %s32_s26 = sshll.u32 %s834_s2, 4  ;;  %s33_s26 = int_to_ptr.vmem [resolvable:$true] %s32_s26 }
   0x3   :  { %15 = vsyncpa [#allocation4], 0  ;;  %s23_s29 = sshll.u32 %s833_s1, 4  ;;  %s696_s30 = smov [#allocation6]   ;;  %s24_s29 = int_to_ptr.vmem [resolvable:$true] %s23_s29 }
   0x4   :  { %35 = dma.vmem_to_smem %s33_s26, 16, %s696_s30, [#allocation7]  }
   0x5   :  { %s697_s8 = smov [#allocation3]   ;;  %s41_s11 = sshll.u32 %s835_s3, 4  ;;  %s42_s11 = int_to_ptr.vmem [resolvable:$true] %s41_s11 }
   0x6   :  { %26 = dma.vmem_to_smem %s24_s29, 16, %s697_s8, [#allocation5]  }
   0x7   :  { %s50_s2 = sshll.u32 %s836_s4, 4  ;;  %s698_s14 = smov [#allocation8]   ;;  %s51_s2 = int_to_ptr.vmem [resolvable:$true] %s50_s2 }
   0x8   :  { %44 = dma.vmem_to_smem %s42_s11, 16, %s698_s14, [#allocation7]  }
   0x9   :  { %s699_s15 = smov [#allocation9]   ;;  %s58_s17 = sshll.u32 %s837_s5, 4  ;;  %s59_s17 = int_to_ptr.hbm [resolvable:$true] %s58_s17 }
   0xa   :  { %53 = dma.vmem_to_smem %s51_s2, 16, %s699_s15, [#allocation10]  }
   0xb   :  { %s700_s18 = smov [#allocation11]   ;;  %s701_s20 = smov 64  }
   0xc   :  { %s60_s19 = sshll.u32 %s700_s18, 4  ;;  %s702_s3 = smov 4   ;;  %s61_s19 = int_to_ptr.vmem [resolvable:$true] %s60_s19 }
   0xd   :  { %66 = dma.hbm_to_vmem [thread:$0]  %s59_s17, 1536, %s61_s19, [#allocation4], %s701_s20, %s701_s20, %s702_s3  }
   0xe   :  { %688 = dma.done.wait [#allocation5], 16  }
   0xf   :  { %689 = vsyncadd [#allocation5], 4294967280 }
  0x10   :  { %690 = dma.done.wait [#allocation7], 32  }
  0x11   :  { %691 = vsyncadd [#allocation7], 4294967264 }
  0x12   :  { %692 = dma.done.wait [#allocation10], 16  }
  0x13   :  { %693 = vsyncadd [#allocation10], 4294967280 }
  0x14   :  { %694 = dma.done.wait [#allocation4], 1536  }
  0x15   :  { %695 = vsyncadd [#allocation4], 4294965760 }
  0x16   :  { %89 = sfence }
  0x17   :  { %v91_v0 = vld [vmem:[%s832_s0] sm:$0x3]  ;;  %s703_s21 = smov 16   ;;  %s704_s22 = smov 112   ;;  %v92_v1 = vlaneseq  ;;  %vm116_vm2 = vcmask 1041408   ;;  %v705_v47 = vmov 256.0  }
  0x18   :  { %95 = vrot.lane.b32.xlu0 %v91_v0, %s703_s21  ;;  %s102_s23 = sld [smem:[#allocation3]]  ;;  %600 = vrcp.f32 %v705_v47  ;;  %vm172_vm7 = vcmask 123904   ;;  %s706_s18 = smov 96   ;;  %vm178_vm14 = vcmask 255104   ;;  %vm183_vm15 = vcmask 386304  }
  0x19   :  { %s498_s24 = sld [smem:[#allocation3 + $0x1]]  ;;  %v93_v2 = vand.u32 127, %v92_v1  ;;  %s707_s19 = smov 48  }
  0x1a   :  { %s500_s25 = sld [smem:[#allocation3 + $0x3]]  ;;  %s708_s3 = smov 32  }
  0x1b   :  { %s501_s26 = sld [smem:[#allocation3 + $0x4]]  ;;  %vm94_vm0 = vcmp.lt.s32.totalorder %v93_v2, 16  ;;  %vm98_vm1 = vcmp.ge.s32.totalorder %v93_v2, 112 }
  0x1c   :  { %s506_s27 = sld [smem:[#allocation3 + $0x6]] }
  0x1d   :  { %s507_s28 = sld [smem:[#allocation3 + $0x7]] }
  0x1e   :  { %s499_s29 = sld [smem:[#allocation3 + $0x2]]  ;;  %v103_v4 = vstv %s102_s23  ;;  %v601_v48 = vpop.eup %600 }
  0x1f   :  { %s502_s30 = sld [smem:[#allocation3 + $0x5]]  ;;  %v106_v5 = vstv %s498_s24  ;;  %v129_v49 = vmul.f32 256.0, %v601_v48  ;;  %vm133_vm3 = vweird.f32 %v601_v48 }
  0x20   :  { %99 = vrot.lane.b32.xlu0 %v91_v0, %s704_s22  ;;  %s508_s8 = sld [smem:[#allocation3 + $0x8]]  ;;  %v191_v6 = vstv %s500_s25  ;;  %v107_v12 = vmul.f32 %v106_v5, %v91_v0 }
  0x21   :  { %s772_s0 = sld [smem:[#allocation6 + $0x2]]  ;;  %v194_v7 = vstv %s501_s26  ;;  %v130_v50 = vsub.f32 1.0, %v129_v49 }
  0x22   :  { %s503_s9 = sld [smem:[#allocation6 + $0x1]]  ;;  %v274_v9 = vstv %s506_s27  ;;  %v195_v14 = vmul.f32 %v194_v7, %v91_v0 }
  0x23   :  { %v277_v10 = vstv %s507_s28  ;;  %s113_s10 = sld [smem:[#allocation6]]  ;;  %v131_v51 = vmul.f32 %v601_v48, %v130_v50 }
  0x24   :  { %v278_v16 = vmul.f32 %v277_v10, %v91_v0  ;;  %v110_v17 = vstv %s499_s29  ;;  %s161_s2 = sld [smem:[#allocation8]] }
  0x25   :  { %v198_v18 = vstv %s502_s30  ;;  %v132_v52 = vadd.f32 %v601_v48, %v131_v51  ;;  %s165_s14 = sld [smem:[#allocation9]] }
  0x26   :  { %v281_v19 = vstv %s508_s8  ;;  %s504_s16 = sld [smem:[#allocation8 + $0x1]] }
  0x27   :  { %v285_v28 = vstv %s772_s0  ;;  %v781_v53 = vsel %vm133_vm3, %v601_v48, %v132_v52  ;;  %s505_s17 = sld [smem:[#allocation9 + $0x1]]  ;;  %vm266_vm3 = vcmask 911104  }
  0x28   :  { %v202_v29 = vstv %s503_s9  ;;  %s510_s5 = sld [smem:[#allocation8 + $0x2]] }
  0x29   :  { %v114_v30 = vstv %s113_s10  ;;  %s511_s23 = sld [smem:[#allocation9 + $0x2]] }
  0x8a   :  { %v96_v3 = vpop.permute.xlu0 %95 }
  0x8b   :  { %v97_v8 = vsel %vm94_vm0, 0.0, %v96_v3  ;;  %vm188_vm0 = vcmask 517504  }
  0x8c   :  { %v104_v11 = vmul.f32 %v103_v4, %v97_v8  ;;  %v192_v13 = vmul.f32 %v191_v6, %v97_v8  ;;  %v275_v15 = vmul.f32 %v274_v9, %v97_v8 }
  0x8e   :  { %v108_v21 = vadd.f32 %v107_v12, %v104_v11  ;;  %v196_v22 = vadd.f32 %v195_v14, %v192_v13  ;;  %v279_v24 = vadd.f32 %v278_v16, %v275_v15 }
  0x92   :  { %v100_v20 = vpop.permute.xlu0 %99 }
  0x93   :  { %v101_v23 = vsel %vm98_vm1, 0.0, %v100_v20  ;;  %vm256_vm1 = vcmask 648704  }
  0x94   :  { %v111_v25 = vmul.f32 %v110_v17, %v101_v23  ;;  %v199_v26 = vmul.f32 %v198_v18, %v101_v23  ;;  %v282_v27 = vmul.f32 %v281_v19, %v101_v23  ;;  %v162_v23 = vstv %s161_s2 }
  0x96   :  { %v283_v31 = vadd.f32 %v282_v27, %v279_v24  ;;  %v200_v32 = vadd.f32 %v199_v26, %v196_v22  ;;  %v112_v33 = vadd.f32 %v111_v25, %v108_v21  ;;  %v166_v26 = vstv %s165_s14 }
  0x98   :  { %v775_v34 = vadd.f32 %v285_v28, %v283_v31  ;;  %v203_v35 = vadd.f32 %v202_v29, %v200_v32  ;;  %v115_v36 = vadd.f32 %v114_v30, %v112_v33 }
  0x9a   :  { %v287_v37 = vsel %vm116_vm2, %v775_v34, 0.0  ;;  %v204_v38 = vsel %vm116_vm2, %v203_v35, 0.0  ;;  %v117_v39 = vsel %vm116_vm2, %v115_v36, 0.0 }
  0x9b   :  { %288 = vadd.xlane.f32.xlu0 %v287_v37  ;;  %205 = vadd.xlane.f32.xlu2 %v204_v38 }
  0x9c   :  { %118 = vadd.xlane.f32.xlu1 %v117_v39 }
 0x10e   :  { %v206_v59 = vpop.xlane.xlu2 %205  ;;  %v289_v30 = vpop.xlane.xlu0 %288 }
 0x10f   :  { %v119_v40 = vpop.xlane.xlu1 %118  ;;  %v207_v60 = vrot.slane %v206_v59, 4  ;;  %v290_v31 = vrot.slane %v289_v30, 4 }
 0x110   :  { %v120_v41 = vrot.slane %v119_v40, 4 }
 0x111   :  { %v208_v61 = vadd.f32 %v207_v60, %v206_v59  ;;  %v291_v32 = vadd.f32 %v290_v31, %v289_v30 }
 0x112   :  { %v121_v42 = vadd.f32 %v120_v41, %v119_v40 }
 0x113   :  { %v209_v62 = vrot.slane %v208_v61, 2  ;;  %v292_v33 = vrot.slane %v291_v32, 2 }
 0x114   :  { %v122_v43 = vrot.slane %v121_v42, 2 }
 0x115   :  { %v210_v2 = vadd.f32 %v209_v62, %v208_v61  ;;  %v293_v38 = vadd.f32 %v292_v33, %v291_v32  ;;  %v242_v62 = vstv %s504_s16 }
 0x116   :  { %v123_v44 = vadd.f32 %v122_v43, %v121_v42 }
 0x117   :  { %v211_v5 = vrot.slane %v210_v2, 1  ;;  %v294_v42 = vrot.slane %v293_v38, 1 }
 0x118   :  { %v124_v45 = vrot.slane %v123_v44, 1 }
 0x119   :  { %v212_v8 = vadd.f32 %v211_v5, %v210_v2 }
 0x11a   :  { %v125_v46 = vadd.f32 %v124_v45, %v123_v44 }
 0x11c   :  { %573 = vpush %v125_v46  ;;  %v295_v46 = vadd.f32 %v294_v42, %v293_v38  ;;  %v568_v38 = vld [vmem:[#allocation11 + $0x38] sm:$0xff] }
 0x11d   :  { %462 = vmatpush.bf16.msra.mxu0 %v568_v38  ;;  %v564_v42 = vld [vmem:[#allocation11 + $0x18] sm:$0xff] }
 0x14d   :  { %s574_s11 = spop %573 }
 0x14e   :  { %v127_v54 = vstv %s574_s11 }
 0x14f   :  { %v135_v55 = vmul.f32 %v781_v53, %v127_v54 }
 0x151   :  { %v136_v56 = vsub.f32 %v115_v36, %v135_v55 }
 0x153   :  { %v137_v57 = vmul.f32 %v136_v56, %v136_v56 }
 0x155   :  { %v138_v58 = vsel %vm116_vm2, %v137_v57, 0.0 }
 0x156   :  { %139 = vadd.xlane.f32.xlu1 %v138_v58 }
 0x1c9   :  { %v140_v63 = vpop.xlane.xlu1 %139 }
 0x1ca   :  { %v141_v0 = vrot.slane %v140_v63, 4 }
 0x1cc   :  { %v142_v1 = vadd.f32 %v141_v0, %v140_v63  ;;  %v246_v0 = vstv %s505_s17 }
 0x1ce   :  { %v143_v3 = vrot.slane %v142_v1, 2 }
 0x1d0   :  { %v144_v4 = vadd.f32 %v143_v3, %v142_v1 }
 0x1d2   :  { %v145_v6 = vrot.slane %v144_v4, 1 }
 0x1d4   :  { %v146_v7 = vadd.f32 %v145_v6, %v144_v4 }
 0x1d6   :  { %575 = vpush %v146_v7 }
 0x1d7   :  { %577 = vpush %v212_v8 }
 0x207   :  { %s576_s12 = spop %575 }
 0x208   :  { %v148_v9 = vstv %s576_s12  ;;  %s578_s13 = spop %577 }
 0x209   :  { %v149_v10 = vmul.f32 %v148_v9, %v781_v53  ;;  %v214_v11 = vstv %s578_s13 }
 0x20a   :  { %v215_v12 = vmul.f32 %v214_v11, %v781_v53 }
 0x20b   :  { %v150_v13 = vadd.f32 1e-05, %v149_v10 }
 0x20c   :  { %v787_v14 = vsub.f32 %v203_v35, %v215_v12 }
 0x20d   :  { %602 = vrsqrt.f32 %v150_v13  ;;  %vm157_vm5 = vweird.f32 %v150_v13 }
 0x20e   :  { %v217_v15 = vmul.f32 %v787_v14, %v787_v14 }
 0x210   :  { %v218_v16 = vsel %vm116_vm2, %v217_v15, 0.0 }
 0x211   :  { %219 = vadd.xlane.f32.xlu2 %v218_v16 }
 0x213   :  { %v603_v17 = vpop.eup %602 }
 0x214   :  { %v152_v18 = vmul.f32 %v603_v17, %v150_v13  ;;  %vm158_vm4 = vweird.f32 %v603_v17 }
 0x215   :  { %vm159_vm6 = vmor %vm157_vm5, %vm158_vm4  ;;  %vm271_vm4 = vcmask 1042304   ;;  %vm458_vm5 = vcmask 523264  }
 0x216   :  { %v153_v19 = vmul.f32 %v603_v17, %v152_v18 }
 0x218   :  { %v154_v20 = vmul.f32 0.5, %v153_v19 }
 0x21a   :  { %v155_v21 = vsub.f32 1.5, %v154_v20 }
 0x21c   :  { %v156_v22 = vmul.f32 %v603_v17, %v155_v21 }
 0x21e   :  { %v160_v24 = vsel %vm159_vm6, %v603_v17, %v156_v22  ;;  %v325_v22 = vstv %s510_s5 }
 0x21f   :  { %v163_v25 = vmul.f32 %v162_v23, %v160_v24 }
 0x221   :  { %v164_v27 = vmul.f32 %v163_v25, %v136_v56  ;;  %v329_v25 = vstv %s511_s23 }
 0x223   :  { %v167_v28 = vadd.f32 %v166_v26, %v164_v27 }
 0x225   :  { %604 = vtanh.f32 %v167_v28 }
 0x22b   :  { %v605_v29 = vpop.eup %604 }
 0x22c   :  { %169 = vrot.lane.b32.xlu2 %v605_v29, %s704_s22 }
 0x284   :  { %v220_v35 = vpop.xlane.xlu2 %219 }
 0x285   :  { %v221_v36 = vrot.slane %v220_v35, 4 }
 0x287   :  { %v222_v37 = vadd.f32 %v221_v36, %v220_v35 }
 0x289   :  { %v223_v39 = vrot.slane %v222_v37, 2 }
 0x28b   :  { %v224_v40 = vadd.f32 %v223_v39, %v222_v37  ;;  %v567_v39 = vld [vmem:[#allocation11 + $0x30] sm:$0xff] }
 0x28c   :  { %v170_v41 = vpop.permute.xlu2 %169  ;;  %463 = vmatpush.bf16.msra.mxu0 %v567_v39 }
 0x28d   :  { %v793_v43 = vmax.f32 %v605_v29, %v170_v41  ;;  %v225_v44 = vrot.slane %v224_v40, 1  ;;  %v565_v41 = vld [vmem:[#allocation11 + $0x20] sm:$0xff] }
 0x28f   :  { %v226_v45 = vadd.f32 %v225_v44, %v224_v40  ;;  %173 = vst.msk [vmem:[#allocation2] sm:$0x3] %vm172_vm7, %v793_v43  ;;  %v566_v40 = vld [vmem:[#allocation11 + $0x28] sm:$0xff]  ;;  %v563_v44 = vld [vmem:[#allocation11 + $0x10] sm:$0xff] }
 0x290   :  { %464 = vmatpush.bf16.msra.mxu0 %v566_v40 }
 0x291   :  { %579 = vpush %v226_v45  ;;  %v571_v45 = vld [vmem:[#allocation11 + $0x50] sm:$0xff] }
 0x292   :  { %581 = vpush %v295_v46 }
 0x294   :  { %465 = vmatpush.bf16.msra.mxu0 %v565_v41 }
 0x298   :  { %466 = vmatpush.bf16.msra.mxu0 %v564_v42 }
 0x29c   :  { %467 = vmatpush.bf16.msra.mxu0 %v563_v44 }
 0x2c2   :  { %s580_s15 = spop %579 }
 0x2c3   :  { %v228_v47 = vstv %s580_s15  ;;  %s582_s1 = spop %581 }
 0x2c4   :  { %v229_v48 = vmul.f32 %v228_v47, %v781_v53  ;;  %v297_v49 = vstv %s582_s1  ;;  %v562_v47 = vld [vmem:[#allocation11 + $0x8] sm:$0xff] }
 0x2c5   :  { %v298_v50 = vmul.f32 %v297_v49, %v781_v53  ;;  %468 = vmatpush.bf16.msra.mxu0 %v562_v47  ;;  %v561_v49 = vld [vmem:[#allocation11] sm:$0xff] }
 0x2c6   :  { %v230_v51 = vadd.f32 1e-05, %v229_v48  ;;  %v570_v48 = vld [vmem:[#allocation11 + $0x48] sm:$0xff] }
 0x2c7   :  { %v800_v52 = vsub.f32 %v775_v34, %v298_v50  ;;  %v569_v50 = vld [vmem:[#allocation11 + $0x40] sm:$0xff] }
 0x2c8   :  { %606 = vrsqrt.f32 %v230_v51  ;;  %vm237_vm9 = vweird.f32 %v230_v51 }
 0x2c9   :  { %v300_v54 = vmul.f32 %v800_v52, %v800_v52  ;;  %469 = vmatpush.bf16.msra.mxu0 %v561_v49 }
 0x2cb   :  { %v301_v55 = vsel %vm116_vm2, %v300_v54, 0.0  ;;  %vm261_vm2 = vcmask 779904  }
 0x2cc   :  { %302 = vadd.xlane.f32.xlu1 %v301_v55 }
 0x2ce   :  { %v607_v56 = vpop.eup %606 }
 0x2cf   :  { %v232_v57 = vmul.f32 %v607_v56, %v230_v51  ;;  %vm238_vm8 = vweird.f32 %v607_v56 }
 0x2d0   :  { %vm239_vm10 = vmor %vm237_vm9, %vm238_vm8 }
 0x2d1   :  { %v233_v58 = vmul.f32 %v607_v56, %v232_v57 }
 0x2d3   :  { %v234_v59 = vmul.f32 0.5, %v233_v58 }
 0x2d5   :  { %v235_v60 = vsub.f32 1.5, %v234_v59  ;;  %v599_v59 = vld [vmem:[%s838_s6] ss:$0 sm:$0xff] }
 0x2d7   :  { %v236_v61 = vmul.f32 %v607_v56, %v235_v60 }
 0x2d9   :  { %v240_v34 = vsel %vm239_vm10, %v607_v56, %v236_v61 }
 0x2da   :  { %v243_v63 = vmul.f32 %v242_v62, %v240_v34 }
 0x2dc   :  { %v244_v1 = vmul.f32 %v243_v63, %v787_v14 }
 0x2de   :  { %v247_v2 = vadd.f32 %v246_v0, %v244_v1 }
 0x2e0   :  { %608 = vtanh.f32 %v247_v2 }
 0x2e6   :  { %v609_v3 = vpop.eup %608 }
 0x2e7   :  { %249 = vrot.lane.b32.xlu1 %v609_v3, %s704_s22 }
 0x2ef   :  { %180 = vrot.lane.b32.xlu1 %v793_v43, %s706_s18 }
 0x33f   :  { %v303_v4 = vpop.xlane.xlu1 %302 }
 0x340   :  { %v304_v5 = vrot.slane %v303_v4, 4 }
 0x342   :  { %v305_v6 = vadd.f32 %v304_v5, %v303_v4 }
 0x344   :  { %v306_v7 = vrot.slane %v305_v6, 2 }
 0x346   :  { %v307_v8 = vadd.f32 %v306_v7, %v305_v6 }
 0x348   :  { %v308_v9 = vrot.slane %v307_v8, 1 }
 0x34a   :  { %v309_v10 = vadd.f32 %v308_v9, %v307_v8 }
 0x34c   :  { %583 = vpush %v309_v10 }
 0x359   :  { %v250_v11 = vpop.permute.xlu1 %249 }
 0x35a   :  { %v251_v12 = vmax.f32 %v609_v3, %v250_v11 }
 0x35c   :  { %258 = vrot.lane.b32.xlu0 %v251_v12, %s707_s19  ;;  %253 = vrot.lane.b32.xlu1 %v251_v12, %s701_s20  ;;  %s709_s20 = smov 80  }
 0x361   :  { %v181_v28 = vpop.permute.xlu1 %180 }
 0x364   :  { %263 = vrot.lane.b32.xlu1 %v251_v12, %s708_s3 }
 0x36c   :  { %268 = vrot.lane.b32.xlu1 %v251_v12, %s703_s21 }
 0x37d   :  { %s584_s4 = spop %583 }
 0x37e   :  { %v311_v13 = vstv %s584_s4 }
 0x37f   :  { %v312_v14 = vmul.f32 %v311_v13, %v781_v53 }
 0x381   :  { %v313_v15 = vadd.f32 1e-05, %v312_v14 }
 0x383   :  { %610 = vrsqrt.f32 %v313_v15  ;;  %vm320_vm12 = vweird.f32 %v313_v15 }
 0x389   :  { %v611_v16 = vpop.eup %610 }
 0x38a   :  { %v315_v17 = vmul.f32 %v611_v16, %v313_v15  ;;  %vm321_vm11 = vweird.f32 %v611_v16 }
 0x38b   :  { %vm322_vm13 = vmor %vm320_vm12, %vm321_vm11 }
 0x38c   :  { %v316_v18 = vmul.f32 %v611_v16, %v315_v17 }
 0x38e   :  { %v317_v19 = vmul.f32 0.5, %v316_v18 }
 0x390   :  { %v318_v20 = vsub.f32 1.5, %v317_v19 }
 0x392   :  { %v319_v21 = vmul.f32 %v611_v16, %v318_v20 }
 0x394   :  { %v323_v23 = vsel %vm322_vm13, %v611_v16, %v319_v21 }
 0x395   :  { %v326_v24 = vmul.f32 %v325_v22, %v323_v23 }
 0x397   :  { %v327_v26 = vmul.f32 %v326_v24, %v800_v52 }
 0x399   :  { %v330_v53 = vadd.f32 %v329_v25, %v327_v26 }
 0x39b   :  { %612 = vtanh.f32 %v330_v53 }
 0x3a1   :  { %v613_v27 = vpop.eup %612 }
 0x3a2   :  { %332 = vrot.lane.b32.xlu2 %v613_v27, %s704_s22 }
 0x3aa   :  { %175 = vrot.lane.b32.xlu2 %v793_v43, %s704_s22 }
 0x3b2   :  { %185 = vrot.lane.b32.xlu2 %v793_v43, %s709_s20  ;;  %v572_v43 = vld [vmem:[#allocation11 + $0x58] sm:$0xff] }
 0x3b3   :  { %479 = vmatpush.bf16.msra.mxu1 %v572_v43 }
 0x3b7   :  { %480 = vmatpush.bf16.msra.mxu1 %v571_v45 }
 0x3bb   :  { %481 = vmatpush.bf16.msra.mxu1 %v570_v48 }
 0x3bf   :  { %482 = vmatpush.bf16.msra.mxu1 %v569_v50 }
 0x3ce   :  { %v254_v29 = vpop.permute.xlu1 %253  ;;  %v259_v36 = vpop.permute.xlu0 %258 }
 0x3d6   :  { %v264_v33 = vpop.permute.xlu1 %263 }
 0x3de   :  { %v269_v37 = vpop.permute.xlu1 %268 }
 0x3fc   :  { %v333_v30 = vpop.permute.xlu2 %332 }
 0x3fd   :  { %v334_v31 = vmax.f32 %v613_v27, %v333_v30 }
 0x3ff   :  { %345 = vrot.lane.b32.xlu0 %v334_v31, %s709_s20  ;;  %337 = vrot.lane.b32.xlu2 %v334_v31, %s704_s22  ;;  %335 = vst.msk [vmem:[#allocation2 + $0x2] sm:$0x3] %vm172_vm7, %v334_v31 }
 0x404   :  { %v176_v32 = vpop.permute.xlu2 %175 }
 0x405   :  { %179 = vst.msk [vmem:[#allocation2] sm:$0x3] %vm178_vm14, %v176_v32 }
 0x406   :  { %184 = vst.msk [vmem:[#allocation2] sm:$0x3] %vm183_vm15, %v181_v28 }
 0x407   :  { %341 = vrot.lane.b32.xlu2 %v334_v31, %s706_s18 }
 0x40c   :  { %v186_v35 = vpop.permute.xlu2 %185 }
 0x40d   :  { %189 = vst.msk [vmem:[#allocation2] sm:$0x3] %vm188_vm0, %v186_v35 }
 0x40e   :  { %257 = vst.msk [vmem:[#allocation2] sm:$0x3] %vm256_vm1, %v254_v29 }
 0x40f   :  { %262 = vst.msk [vmem:[#allocation2] sm:$0x3] %vm261_vm2, %v259_v36 }
 0x410   :  { %267 = vst.msk [vmem:[#allocation2] sm:$0x3] %vm266_vm3, %v264_v33 }
 0x411   :  { %272 = vst.msk [vmem:[#allocation2] sm:$0x3] %vm271_vm4, %v269_v37 }
 0x459   :  { %v338_v46 = vpop.permute.xlu2 %337 }
 0x45a   :  { %340 = vst.msk [vmem:[#allocation2 + $0x2] sm:$0x3] %vm178_vm14, %v338_v46 }
 0x461   :  { %v342_v51 = vpop.permute.xlu2 %341 }
 0x462   :  { %344 = vst.msk [vmem:[#allocation2 + $0x2] sm:$0x3] %vm183_vm15, %v342_v51 }
 0x471   :  { %v346_v52 = vpop.permute.xlu0 %345 }
 0x472   :  { %348 = vst.msk [vmem:[#allocation2 + $0x2] sm:$0x3] %vm188_vm0, %v346_v52 }
 0x479   :  { %v349_v54 = vld [vmem:[#allocation2] sm:$0xf] }
 0x47a   :  { %351 = vst [vmem:[#allocation1] ss:$4 sm:$0xff] %v349_v54 }
 0x481   :  { %v352_v55 = vld.sshfl [vmem:[#allocation1] sm:$0xff pattern:$0x73625140]  ;;  %v353_v56 = vld.sshfl [vmem:[#allocation1 + $0x8] sm:$0xff pattern:$0x73625140] }
 0x482   :  { %v356_v57 = vpack.c.bf16 %v352_v55, %v352_v55  ;;  %v357_v58 = vpack.c.bf16 %v353_v56, %v353_v56 }
 0x484   :  { %470 = vmatmul.bf16.vlgmr.msra.gmra.mxu0 %v356_v57  ;;  %560 = vmatmul.msk.bf16.vlgmr.msra.gmra.mxu1 %vm458_vm5, %v357_v58 }
 0x501   :  { %v471_v60 = vpop.f32.mrf.mxu0  ;;  %v484_v61 = vpop.f32.mrf.mxu1 }
 0x502   :  { %v472_v62 = vadd.f32 %v599_v59, %v471_v60 }
 0x504   :  { %v485_v34 = vadd.f32 %v484_v61, %v472_v62 }
 0x506   :  { %614 = vtanh.f32 %v485_v34 }
 0x509   :  { %v473_v63 = vpop.f32.mrf.mxu0  ;;  %v486_v0 = vpop.f32.mrf.mxu1 }
 0x50c   :  { %v615_v1 = vpop.eup %614 }
 0x50d   :  { %489 = vst [vmem:[%s839_s7] sm:$0x3] %v615_v1 }
 0x50e   :  { %494 = vsyncpa [#allocation4], 1 }
 0x50f   :  { %495 = vsyncpa [#allocation5], 1 }
 0x510   :  { %496 = vsyncpa [#allocation7], 1 }
 0x511   :  { %497 = vsyncpa [#allocation10], 1 }

</bundles_post_ra>
